<compile_context>
chip_gen: v6e
topology: v6e:2x2x1
jax: 0.10.0
libtpu: 0.0.40
codegen_flags: <defaults>
</compile_context>

<pallas_src>
import functools

import jax
import jax.numpy as jnp
from jax.experimental import pallas as pl
from jax.experimental.pallas import tpu as pltpu

EPS = 1e-6


# ----------------------- fused Residual(PreNorm + Linear) kernel -----------------------
def _residual_prenorm_linear_kernel(x_ref, g_ref, b_ref, w_ref, bias_ref, *rest,
                                    add_residual, separate_residual, matmul_dtype):
    # x_ref:    (TM, D_in)  row tile (full feature dim -> LayerNorm is exact)
    # g_ref/b_ref: (1, D_in)
    # w_ref:    (D_in, TN)  column tile of W, already in `matmul_dtype`
    # bias_ref: (1, TN)
    # rest:     [xres_ref (TM, TN) when residual is N-tiled], o_ref (TM, TN)
    if separate_residual:
        xres_ref, o_ref = rest
    else:
        (o_ref,) = rest

    x = x_ref[...].astype(jnp.float32)

    # LayerNorm over the last axis, f32 math (matches nn.LayerNorm).
    mean = jnp.mean(x, axis=-1, keepdims=True)
    xc = x - mean
    var = jnp.mean(xc * xc, axis=-1, keepdims=True)
    xn = xc * jax.lax.rsqrt(var + EPS)
    xn = xn * g_ref[...].astype(jnp.float32) + b_ref[...].astype(jnp.float32)

    # Linear (the wrapped fn): MXU matmul in `matmul_dtype` (bf16 by default,
    # 4x MXU rate vs f32), accumulated in f32.
    y = jnp.dot(xn.astype(matmul_dtype), w_ref[...],
                preferred_element_type=jnp.float32)
    y = y + bias_ref[...].astype(jnp.float32)

    if add_residual:  # static: decided once at module construction (torch.rand(1))
        if separate_residual:
            y = y + xres_ref[...].astype(jnp.float32)
        else:
            y = y + x

    o_ref[...] = y.astype(o_ref.dtype)


# ----------------------------------- tile chooser -----------------------------------
def _choose_tiles(n_rows, d_in, d_out_p, x_itemsize, w_itemsize, out_itemsize,
                  *, add_residual, max_row_tile=512):
    """Pick (row_tile, col_tile, vmem_limit).  Row tile targets the ~512-row
    HBM-roofline plateau; the W column tile shrinks first when VMEM is tight."""
    # Per-generation VMEM budget.
    try:
        vmem_phys = int(pltpu.get_tpu_info().vmem_capacity_bytes)
    except Exception:
        vmem_phys = 64 * 1024 * 1024  # conservative fallback (v7x-sized)
    if vmem_phys >= 100 * 1024 * 1024:        # v5e / v6e: 128 MiB physical
        budget = 64 * 1024 * 1024
        limit_cap = 100 * 1024 * 1024
    else:                                     # v7x: 64 MiB physical
        budget = 28 * 1024 * 1024
        limit_cap = 48 * 1024 * 1024

    def need(tm_, tn_):
        # Pallas double-buffers every blocked operand; dtype-aware bytes.
        res_extra = (2 * tm_ * tn_ * x_itemsize
                     if (add_residual and tn_ < d_out_p) else 0)
        return (2 * tm_ * d_in * x_itemsize        # x row tile
                + 2 * tm_ * tn_ * out_itemsize     # out tile
                + 2 * d_in * tn_ * w_itemsize      # W column tile
                + 2 * tn_ * 4                      # bias (f32)
                + 2 * 2 * d_in * 4                 # gamma + beta (f32)
                + res_extra)

    n_pad8 = ((n_rows + 7) // 8) * 8
    tm = min(max_row_tile, n_pad8)
    tm = max(8, (tm // 8) * 8)

    # Column-tile candidates: divisors of d_out_p that are multiples of 128
    # (largest first).  If d_out_p is not a multiple of 128 it stays whole.
    if d_out_p % 128 == 0:
        cands = [d_out_p // g for g in range(1, d_out_p // 128 + 1)
                 if d_out_p % g == 0 and (d_out_p // g) % 128 == 0]
    else:
        cands = [d_out_p]
    tn = cands[-1]
    for c in cands:
        if need(tm, c) <= budget:
            tn = c
            break

    # If even the smallest column tile doesn't fit, shrink the row tile.
    while need(tm, tn) > budget and tm > 8:
        tm = max(8, ((tm // 2) // 8) * 8)

    # v7x only (2 TensorCores): make sure both cores get work for tiny inputs.
    if vmem_phys < 100 * 1024 * 1024:
        if pl.cdiv(n_pad8, tm) * (d_out_p // tn) == 1 and n_pad8 >= 16:
            tm = max(8, ((tm // 2) // 8) * 8)

    vmem_limit = int(min(max(2 * need(tm, tn), 32 * 1024 * 1024), limit_cap))
    return tm, tn, vmem_limit


# ------------------------------------- wrapper -------------------------------------
def residual_prenorm_linear(x, gamma, beta, w, bias, *, add_residual,
                            matmul_dtype=jnp.bfloat16, max_row_tile=512):
    """Residual(survival_prob, PreNorm(dim, Linear)).forward(x), fully fused.

    matmul_dtype: dtype the MXU matmul runs in (bf16 default for throughput;
    pass jnp.float32 for exact parity with an f32 reference).
    """
    orig_shape = x.shape
    d_in = orig_shape[-1]
    d_out = w.shape[1]
    if add_residual:
        assert d_in == d_out, "residual add requires fn to preserve the feature dim"

    x2 = x.reshape(-1, d_in)
    n = x2.shape[0]
    out_dtype = x.dtype

    # Lane-dense output insurance: pad the out-feature dim of W/bias to a
    # multiple of 128 (one-time tiny pad of the *weights*, not the activations).
    d_out_p = d_out
    if d_out % 128 != 0 and not add_residual:
        d_out_p = ((d_out + 127) // 128) * 128
        w = jnp.pad(w, ((0, 0), (0, d_out_p - d_out)))
        bias = jnp.pad(bias, ((0, d_out_p - d_out),))
    # TODO(synk): when add_residual and d_out % 128 != 0 we accept masked stores.

    w_c = w.astype(matmul_dtype)
    g2 = gamma.reshape(1, d_in)
    b2 = beta.reshape(1, d_in)
    bias2 = bias.reshape(1, d_out_p).astype(jnp.float32)

    tm, tn, vmem_limit = _choose_tiles(
        n, d_in, d_out_p,
        x2.dtype.itemsize, jnp.dtype(matmul_dtype).itemsize,
        jnp.dtype(out_dtype).itemsize,
        add_residual=add_residual, max_row_tile=max_row_tile)

    grid_m = pl.cdiv(n, tm)        # ragged final row block handled by Pallas
    grid_n = d_out_p // tn
    separate_residual = add_residual and grid_n > 1

    in_specs = [
        pl.BlockSpec((tm, d_in), lambda i, j: (i, 0)),   # x (full row for LN)
        pl.BlockSpec((1, d_in), lambda i, j: (0, 0)),    # gamma (fetched once)
        pl.BlockSpec((1, d_in), lambda i, j: (0, 0)),    # beta  (fetched once)
        pl.BlockSpec((d_in, tn), lambda i, j: (0, j)),   # W column tile
        pl.BlockSpec((1, tn), lambda i, j: (0, j)),      # bias column tile
    ]
    inputs = [x2, g2, b2, w_c, bias2]
    if separate_residual:
        # Residual slice of x matching the output column tile (only needed when
        # W is column-tiled; W DMA dominates in that regime).
        in_specs.append(pl.BlockSpec((tm, tn), lambda i, j: (i, j)))
        inputs.append(x2)

    flops = 2 * n * d_in * d_out_p
    bytes_accessed = (x2.size * x2.dtype.itemsize * (2 if separate_residual else 1)
                      + w_c.size * w_c.dtype.itemsize
                      + bias2.size * 4 + g2.size * 4 + b2.size * 4
                      + n * d_out_p * jnp.dtype(out_dtype).itemsize)

    kernel = functools.partial(_residual_prenorm_linear_kernel,
                               add_residual=add_residual,
                               separate_residual=separate_residual,
                               matmul_dtype=matmul_dtype)

    out = pl.pallas_call(
        kernel,
        out_shape=jax.ShapeDtypeStruct((n, d_out_p), out_dtype),
        grid_spec=pltpu.PrefetchScalarGridSpec(
            num_scalar_prefetch=0,
            grid=(grid_m, grid_n),
            in_specs=in_specs,
            out_specs=pl.BlockSpec((tm, tn), lambda i, j: (i, j)),
        ),
        compiler_params=pltpu.CompilerParams(
            dimension_semantics=("parallel", "parallel"),
            vmem_limit_bytes=vmem_limit,
        ),
        cost_estimate=pl.CostEstimate(flops=flops, transcendentals=0,
                                      bytes_accessed=bytes_accessed),
    )(*inputs)

    if d_out_p != d_out:
        out = out[:, :d_out]
    return out.reshape(orig_shape[:-1] + (d_out,))


# ----------------------------------------- main -----------------------------------------
if __name__ == "__main__":
    B, S, D = 2, 8, 128  # batch, seq, feature dim
    survival_prob = 0.9

    key = jax.random.PRNGKey(0)
    kprob, kx, kw, kb = jax.random.split(key, 4)

    # Residual.__init__: prob = torch.rand(1) -> drawn once; branch is static.
    prob = float(jax.random.uniform(kprob, ()))
    add_residual = prob <= survival_prob

    x = jax.random.normal(kx, (B, S, D), dtype=jnp.float32)

    # PreNorm LayerNorm params: PyTorch default init (gamma=1, beta=0).
    gamma = jnp.ones((D,), dtype=jnp.float32)
    beta = jnp.zeros((D,), dtype=jnp.float32)

    # Deterministic params for the wrapped fn (Linear D -> D).
    w = jax.random.normal(kw, (D, D), dtype=jnp.float32) * (1.0 / jnp.sqrt(D))
    b = jax.random.normal(kb, (D,), dtype=jnp.float32) * 0.01

    # Pure-JAX reference: Residual(survival_prob, PreNorm(Linear)).forward(x)
    mean = jnp.mean(x, axis=-1, keepdims=True)
    var = jnp.mean((x - mean) ** 2, axis=-1, keepdims=True)
    xn = ((x - mean) / jnp.sqrt(var + EPS)) * gamma + beta
    ref = jnp.dot(xn, w, precision=jax.lax.Precision.HIGHEST) + b
    if add_residual:
        ref = ref + x

    # 1) Exact-parity path: f32 matmul.
    out_f32 = residual_prenorm_linear(x, gamma, beta, w, b,
                                      add_residual=add_residual,
                                      matmul_dtype=jnp.float32)
    out_f32 = jax.block_until_ready(out_f32)
    assert jnp.allclose(out_f32, ref, atol=1e-3, rtol=1e-3), "f32 path mismatch"

    # 2) Default fast path: bf16 matmul, f32 accumulation.
    out_bf16 = residual_prenorm_linear(x, gamma, beta, w, b,
                                       add_residual=add_residual)
    out_bf16 = jax.block_until_ready(out_bf16)
    assert jnp.allclose(out_bf16, ref, atol=3e-2, rtol=3e-2), "bf16 path mismatch"

    print("KERNEL_OK")
</pallas_src>

<mosaic_0001>
module attributes {stable_mosaic.version = 11 : i64} {
  func.func @_residual_prenorm_linear_kernel(%arg0: i32, %arg1: i32, %arg2: memref<8x128xf32, #tpu.memory_space<vmem>>, %arg3: memref<1x128xf32, #tpu.memory_space<vmem>>, %arg4: memref<1x128xf32, #tpu.memory_space<vmem>>, %arg5: memref<128x128xf32, #tpu.memory_space<vmem>>, %arg6: memref<1x128xf32, #tpu.memory_space<vmem>>, %arg7: memref<8x128xf32, #tpu.memory_space<vmem>>) attributes {dimension_semantics = [#tpu.dimension_semantics<parallel>, #tpu.dimension_semantics<parallel>], iteration_bounds = array<i64: 2, 1>, scalar_prefetch = 0 : i64, scratch_operands = 0 : i64, tpu.core_type = #tpu.core_type<tc>, window_params = [{transform_indices = @transform_0, window_bounds = array<i64: 8, 128>}, {pipeline_mode = #tpu.pipeline_mode<synchronous>, transform_indices = @transform_1, window_bounds = array<i64: 1, 128>}, {pipeline_mode = #tpu.pipeline_mode<synchronous>, transform_indices = @transform_2, window_bounds = array<i64: 1, 128>}, {transform_indices = @transform_3, window_bounds = array<i64: 128, 128>}, {transform_indices = @transform_4, window_bounds = array<i64: 1, 128>}, {transform_indices = @transform_5, window_bounds = array<i64: 8, 128>}]} {
    %c0 = arith.constant 0 : index
    %c0_0 = arith.constant 0 : index
    %0 = vector.load %arg2[%c0, %c0_0] : memref<8x128xf32, #tpu.memory_space<vmem>>, vector<8x128xf32>
    %cst = arith.constant dense<0.000000e+00> : vector<8xf32>
    %1 = vector.multi_reduction <add>, %0, %cst [1] : vector<8x128xf32> to vector<8xf32>
    %2 = vector.shape_cast %1 : vector<8xf32> to vector<8x1xf32>
    %cst_1 = arith.constant 1.280000e+02 : f32
    %3 = vector.broadcast %cst_1 : f32 to vector<8x1xf32>
    %4 = arith.divf %2, %3 : vector<8x1xf32>
    %5 = vector.broadcast %4 : vector<8x1xf32> to vector<8x128xf32>
    %6 = arith.subf %0, %5 : vector<8x128xf32>
    %7 = arith.mulf %6, %6 : vector<8x128xf32>
    %cst_2 = arith.constant dense<0.000000e+00> : vector<8xf32>
    %8 = vector.multi_reduction <add>, %7, %cst_2 [1] : vector<8x128xf32> to vector<8xf32>
    %9 = vector.shape_cast %8 : vector<8xf32> to vector<8x1xf32>
    %cst_3 = arith.constant 1.280000e+02 : f32
    %10 = vector.broadcast %cst_3 : f32 to vector<8x1xf32>
    %11 = arith.divf %9, %10 : vector<8x1xf32>
    %cst_4 = arith.constant 9.99999997E-7 : f32
    %12 = vector.broadcast %cst_4 : f32 to vector<8x1xf32>
    %13 = arith.addf %11, %12 : vector<8x1xf32>
    %14 = math.rsqrt %13 : vector<8x1xf32>
    %15 = vector.broadcast %14 : vector<8x1xf32> to vector<8x128xf32>
    %16 = arith.mulf %6, %15 : vector<8x128xf32>
    %c0_5 = arith.constant 0 : index
    %c0_6 = arith.constant 0 : index
    %17 = vector.load %arg3[%c0_5, %c0_6] : memref<1x128xf32, #tpu.memory_space<vmem>>, vector<1x128xf32>
    %18 = vector.broadcast %17 : vector<1x128xf32> to vector<8x128xf32>
    %19 = arith.mulf %16, %18 : vector<8x128xf32>
    %c0_7 = arith.constant 0 : index
    %c0_8 = arith.constant 0 : index
    %20 = vector.load %arg4[%c0_7, %c0_8] : memref<1x128xf32, #tpu.memory_space<vmem>>, vector<1x128xf32>
    %21 = vector.broadcast %20 : vector<1x128xf32> to vector<8x128xf32>
    %22 = arith.addf %19, %21 : vector<8x128xf32>
    %c0_9 = arith.constant 0 : index
    %c0_10 = arith.constant 0 : index
    %23 = vector.load %arg5[%c0_9, %c0_10] : memref<128x128xf32, #tpu.memory_space<vmem>>, vector<128x128xf32>
    %cst_11 = arith.constant dense<0.000000e+00> : vector<8x128xf32>
    %24 = tpu.matmul %22, %23, %cst_11 {dimension_numbers = #tpu.dot_dimension_numbers<[1], [0], [0], [1], [0, 0, 1, 1], [], []>} : vector<8x128xf32>, vector<128x128xf32>, vector<8x128xf32> -> vector<8x128xf32>
    %c0_12 = arith.constant 0 : index
    %c0_13 = arith.constant 0 : index
    %25 = vector.load %arg6[%c0_12, %c0_13] : memref<1x128xf32, #tpu.memory_space<vmem>>, vector<1x128xf32>
    %26 = vector.broadcast %25 : vector<1x128xf32> to vector<8x128xf32>
    %27 = arith.addf %24, %26 : vector<8x128xf32>
    %28 = arith.addf %27, %0 : vector<8x128xf32>
    %c0_14 = arith.constant 0 : index
    %c0_15 = arith.constant 0 : index
    %29 = vector.load %arg7[%c0_14, %c0_15] : memref<8x128xf32, #tpu.memory_space<vmem>>, vector<8x128xf32>
    tpu.vector_store %arg7[%c0_14, %c0_15], %28 {strides = array<i32>} : memref<8x128xf32, #tpu.memory_space<vmem>>, vector<8x128xf32>,
    return
  }
  func.func @transform_0(%arg0: i32, %arg1: i32) -> (i32, i32) {
    %c0_i32 = arith.constant 0 : i32
    %c0_i32_0 = arith.constant 0 : i32
    return %arg0, %c0_i32 : i32, i32
  }
  func.func @transform_1(%arg0: i32, %arg1: i32) -> (i32, i32) {
    %c0_i32 = arith.constant 0 : i32
    %c0_i32_0 = arith.constant 0 : i32
    %c0_i32_1 = arith.constant 0 : i32
    return %c0_i32, %c0_i32_0 : i32, i32
  }
  func.func @transform_2(%arg0: i32, %arg1: i32) -> (i32, i32) {
    %c0_i32 = arith.constant 0 : i32
    %c0_i32_0 = arith.constant 0 : i32
    %c0_i32_1 = arith.constant 0 : i32
    return %c0_i32, %c0_i32_0 : i32, i32
  }
  func.func @transform_3(%arg0: i32, %arg1: i32) -> (i32, i32) {
    %c0_i32 = arith.constant 0 : i32
    %c0_i32_0 = arith.constant 0 : i32
    return %c0_i32, %arg1 : i32, i32
  }
  func.func @transform_4(%arg0: i32, %arg1: i32) -> (i32, i32) {
    %c0_i32 = arith.constant 0 : i32
    %c0_i32_0 = arith.constant 0 : i32
    return %c0_i32, %arg1 : i32, i32
  }
  func.func @transform_5(%arg0: i32, %arg1: i32) -> (i32, i32) {
    %c0_i32 = arith.constant 0 : i32
    return %arg0, %arg1 : i32, i32
  }
}

</mosaic_0001>

<bundles_post_ra>
// kernel: tpu_custom_call.1
= control target key start
LH: loop header
LB: loop body
LE: loop exit
PB: predicated region body
PF: predicated region fallthrough
CT: control target
= control target key end

     0   :  { %s1044_s0 = inlined_call_operand.hbm [shape: f32[16,128], index: 0, kind: input, shape index: {}]   ;;  %s1045_s1 = inlined_call_operand.vmem [shape: f32[1,128], index: 1, kind: input, shape index: {}]   ;;  %s1046_s2 = inlined_call_operand.vmem [shape: f32[1,128], index: 2, kind: input, shape index: {}]   ;;  %s1047_s3 = inlined_call_operand.hbm [shape: f32[128,128], index: 3, kind: input, shape index: {}]   ;;  %s1048_s4 = inlined_call_operand.vmem [shape: f32[1,128], index: 4, kind: input, shape index: {}]   ;;  %s1049_s5 = inlined_call_operand.hbm [shape: f32[16,128], index: 5, kind: output, shape index: {}]  }
   0x1   :  { %1052 = sst [smem:[#allocation12_spill]] %s1047_s3 }
   0x2   :  { %10 = vsyncpa [#allocation3], 0 }
   0x3   :  { %12 = vsyncpa [#allocation3 + $0x1], 0 }
   0x4   :  { %13 = vsyncpa [#allocation6], 0 }
   0x5   :  { %14 = vsyncpa [#allocation4], 0 }
   0x6   :  { %16 = vsyncpa [#allocation4 + $0x1], 0  ;;  %s859_s18 = smov 0   ;;  %s861_s19 = smov 0  }
   0x7   :  { %s863_s20 = smov 0   ;;  %s865_s21 = smov 0  }
   0x8   :  { %s867_s22 = smov 0   ;;  %s869_s23 = smov 0  }
   0x9 LB: > { %s532_s24 = sadd.s32 4294967295, %s820_s23   ;;  %s533_s25 = sadd.s32 4294967294, %s820_s23   ;;  %s820_s23 = sphi %s869_s23, %s22_s23   ;;  %s816_s22 = sphi %s867_s22, %s1072_s22   ;;  %s812_s21 = sphi %s865_s21, %s1071_s21   ;;  %s808_s20 = sphi %s863_s20, %s1070_s20   ;;  %s804_s19 = sphi %s861_s19, %s1069_s19   ;;  %s800_s18 = sphi %s859_s18, %s1068_s18  }
   0xa   : > { %p54_p0 = scmp.ne.s32.totalorder %s804_s19, %s800_s18  ;;  %p893_p1 = scmp.eq.s32.totalorder %s532_s24, 0 }
   0xb   : > { %p897_p2 = scmp.eq.s32.totalorder %s532_s24, 1  ;;  %p180_p3 = scmp.eq.s32.totalorder %s533_s25, 1 }
   0xc   : > { %p903_p4 = por %p893_p1, %p54_p0  ;;  %p534_p5 = scmp.ge.s32.totalorder %s820_s23, 1 }
   0xd   : > { %p908_p6 = por %p180_p3, %p54_p0  ;;  %p187_p7 = scmp.lt.s32.totalorder %s820_s23, 3 }
   0xe   : > { %s1055_s28 = scalar_select %p903_p4, 1, 0 }
   0xf   : > { %s1056_s29 = scalar_select %p908_p6, 1, 0 }
  0x10   : > { %p913_p8 = pnand %p534_p5, %p187_p7  ;;  %s822_s6 = smov [#allocation5]  }
  0x11   : > { %s207_s7 = sshll.u32 %s822_s6, 4  ;;  %s34_s9 = sadd.s32 1, %s816_s22  ;;  %s208_s7 = int_to_ptr.vmem [resolvable:$true] %s207_s7 }
  0x12   : > { %p611_p9 = pneg %p913_p8  ;;  %s693_s10 = scalar_lea.vmem %s208_s7, 2048 }
  0x13   : > { %p694_p13 = scmp.ne.s32.totalorder %s208_s7, %s693_s10  ;;  %p701_p5 = scmp.lt.s32.totalorder %s208_s7, %s208_s7 }
  0x14   : > { %p922_p11 = pnand %p611_p9, %p893_p1  ;;  %p702_p7 = scmp.lt.s32.totalorder %s693_s10, %s693_s10 }
  0x16   : > { %p684_p12 = pneg %p922_p11  ;;  %p703_p6 = por %p702_p7, %p701_p5 }
  0x18   : > { %p696_p0 = pnand %p694_p13, %p684_p12 }
  0x1a   : > { %p697_p3 = pneg %p696_p0 }
  0x1c   : > { %p704_p4 = pnand %p703_p6, %p697_p3 }
  0x1e   : > { %707 = shalt.err (!%p704_p4)
}
  0x1f   : > { %s823_s11 = smov 128   ;;  %s824_s12 = smov 8  }
  0x20   : > { %s1059_s3 = sld [smem:[#allocation12_spill]]  ;;  %p36_p6 = scmp.ge.s32.totalorder %s34_s9, 2 }
  0x21   : > { %s41_s15 = sadd.s32 1, %s808_s20  ;;  %p48_p4 = scmp.ne.s32.totalorder %s808_s20, %s804_s19 }
  0x22   : > { %p49_p9 = scmp.eq.s32.totalorder %s820_s23, 0  ;;  %s1074_s9 = smov (%p36_p6, %s34_s9), 0 }
  0x23   : > { %1060 = sst [smem:[#allocation11_spill]] %s1074_s9  ;;  %p946_p13 = por %p897_p2, %p48_p4 }
  0x24   : > { %p940_p12 = por %p49_p9, %p48_p4  ;;  %s38_s24 = ssub.s32 %s816_s22, %s1074_s9 }
  0x25   : > { %p624_p0 = scmp.lt.s32.totalorder %s820_s23, 2  ;;  %s227_s25 = sand.u32 1, %s808_s20  }
  0x26   : > { %614 = dma.hbm_to_vmem [thread:$0]  (!%p922_p11), %s1059_s3, 2048, %s208_s7, [#allocation6], %s823_s11, %s823_s11, %s824_s12  }
  0x27   : > { %p39_p11 = scmp.eq.s32.totalorder %s38_s24, 0  ;;  %s538_s6 = sshll.u32 %s227_s25, 3 }
  0x28   : > { %s539_s8 = sshll.u32 %s816_s22, 7  ;;  %s231_s13 = scalar_lea.vmem [#allocation2], %s538_s6 }
  0x29   : > { %s955_s7 = scalar_select %p39_p11, %s808_s20, %s41_s15  }
  0x2a   : > { %s236_s12 = scalar_lea.hbm %s1044_s0, %s539_s8  ;;  %s238_s14 = sshll.u32 %s231_s13, 4  ;;  %s239_s14 = int_to_ptr.vmem [resolvable:$true] %s238_s14 }
  0x2b   : > { %p963_p2 = pnand %p624_p0, %p940_p12  ;;  %s228_s3 = scalar_lea.sflag [#allocation3], %s227_s25 }
  0x2c   : > { %s721_s24 = scalar_lea.vmem %s239_s14, 128  ;;  %s825_s15 = smov [#allocation2]  }
  0x2d   : > { %p710_p3 = pneg %p963_p2  ;;  %p722_p5 = scmp.ne.s32.totalorder %s239_s14, %s721_s24 }
  0x2e   : > { %s726_s9 = sshll.u32 %s825_s15, 4  ;;  %s727_s9 = int_to_ptr.vmem [resolvable:$false] %s726_s9 }
  0x2f   : > { %p724_p7 = pnand %p722_p5, %p710_p3  ;;  %s728_s8 = scalar_lea.vmem %s727_s9, 256 }
  0x30   : > { %p729_p4 = scmp.lt.s32.totalorder %s239_s14, %s727_s9  ;;  %p730_p9 = scmp.lt.s32.totalorder %s728_s8, %s721_s24 }
  0x31   : > { %p725_p6 = pneg %p724_p7 }
  0x32   : > { %p731_p11 = por %p730_p9, %p729_p4 }
  0x34   : > { %p732_p10 = pnand %p731_p11, %p725_p6 }
  0x36   : > { %735 = shalt.err (!%p732_p10)
}
  0x37   : > { %618 = dma.hbm_to_vmem [thread:$0]  (!%p963_p2), %s236_s12, 128, %s239_s14, %s228_s3  }
  0x38   : > { %247 = sbr.rel (%p913_p8) target bundleno = 581 (0x245), region = 40  ;;  %s974_s16 = sand.u32 (!%p913_p8), 1, %s804_s19  }
  0x39   : > { %s541_s25 = sshll.u32 (!%p913_p8), %s974_s16, 3  ;;  %s250_s6 = scalar_lea.sflag (!%p913_p8), [#allocation3], %s974_s16 }
  0x3a   : > { %s253_s9 = scalar_lea.vmem (!%p913_p8), [#allocation2], %s541_s25  ;;  %p1064_p12 = scmp.ne.s32.totalorder (!%p913_p8), %s1055_s28, 0 }
  0x3d   : > { %787 = dma.done.wait (%p1064_p12), %s250_s6, 128  }
  0x3e   : > { %789 = vsyncadd (%p1064_p12), %s250_s6, 4294967168 }
  0x3f   : > { %791 = dma.done.wait (%p893_p1), [#allocation6], 2048  }
  0x40   : > { %793 = vsyncadd (%p893_p1), [#allocation6], 4294965248  ;;  %v988_v0 = vld [vmem:[%s253_s9] sm:$0xff]  ;;  %v826_v2 = vmov 0.0   ;;  %v332_v4 = vld [vmem:[#allocation5 + $0x68] sm:$0xff]  ;;  %vm827_vm0 = vmmov 0  }
  0x41   : > { %291 = vadd.xlane.f32.xlu0 %v988_v0  ;;  %v334_v1 = vld [vmem:[#allocation5 + $0x78] sm:$0xff]  ;;  %568 = vmatprep.subr.mxu0 %v826_v2  ;;  %v333_v3 = vld [vmem:[#allocation5 + $0x70] sm:$0xff]  ;;  %v331_v5 = vld [vmem:[#allocation5 + $0x60] sm:$0xff]  ;;  %s548_s12 = sshll.u32 %s812_s21, 7  ;;  %s286_s13 = scalar_lea.vmem [#allocation7], %s541_s25 }
  0x42   : > { %569 = vmatpush3.msra.mxu0 %v334_v1  ;;  %v330_v10 = vld [vmem:[#allocation5 + $0x58] sm:$0xff]  ;;  %v329_v11 = vld [vmem:[#allocation5 + $0x50] sm:$0xff]  ;;  %v328_v12 = vld [vmem:[#allocation5 + $0x48] sm:$0xff]  ;;  %600 = vmatprep.mubr.msk.f32.mxu0 %vm827_vm0, %v826_v2  ;;  %s429_s14 = sshll.u32 %s286_s13, 4  ;;  %s427_s15 = scalar_lea.hbm %s1049_s5, %s548_s12  ;;  %s430_s14 = int_to_ptr.vmem [resolvable:$true] %s429_s14 }
  0x43   : > { %570 = vmatprep.subr.mxu0 %v826_v2  ;;  %v327_v13 = vld [vmem:[#allocation5 + $0x40] sm:$0xff]  ;;  %v326_v14 = vld [vmem:[#allocation5 + $0x38] sm:$0xff]  ;;  %v325_v15 = vld [vmem:[#allocation5 + $0x30] sm:$0xff]  ;;  %s415_s8 = scalar_lea.sflag [#allocation4], %s974_s16  ;;  %s736_s6 = scalar_lea.vmem %s430_s14, 128 }
  0x44   : > { %571 = vmatpush3.msra.mxu0 %v333_v3  ;;  %v324_v16 = vld [vmem:[#allocation5 + $0x28] sm:$0xff]  ;;  %v323_v17 = vld [vmem:[#allocation5 + $0x20] sm:$0xff]  ;;  %v322_v18 = vld [vmem:[#allocation5 + $0x18] sm:$0xff]  ;;  %p737_p1 = scmp.ne.s32.totalorder %s430_s14, %s736_s6  ;;  %s828_s21 = smov [#allocation7]  }
  0x45   : > { %572 = vmatprep.subr.mxu0 %v826_v2  ;;  %v321_v19 = vld [vmem:[#allocation5 + $0x10] sm:$0xff]  ;;  %v320_v20 = vld [vmem:[#allocation5 + $0x8] sm:$0xff]  ;;  %v319_v21 = vld [vmem:[#allocation5] sm:$0xff]  ;;  %s740_s9 = sshll.u32 %s828_s21, 4  ;;  %s741_s9 = int_to_ptr.vmem [resolvable:$false] %s740_s9 }
  0x46   : > { %573 = vmatpush3.msra.mxu0 %v332_v4  ;;  %v544_v26 = vld [vmem:[%s1045_s1] ss:$0 sm:$0xff]  ;;  %p738_p8 = pnand %p737_p1, %p946_p13  ;;  %s742_s25 = scalar_lea.vmem %s741_s9, 256 }
  0x47   : > { %574 = vmatprep.subr.mxu0 %v826_v2  ;;  %v545_v28 = vld [vmem:[%s1046_s2] ss:$0 sm:$0xff]  ;;  %p743_p0 = scmp.lt.s32.totalorder %s430_s14, %s741_s9  ;;  %p744_p2 = scmp.lt.s32.totalorder %s742_s25, %s736_s6 }
  0x48   : > { %575 = vmatpush3.msra.mxu0 %v331_v5  ;;  %v546_v31 = vld [vmem:[%s1048_s4] ss:$0 sm:$0xff]  ;;  %p739_p10 = pneg %p738_p8 }
  0x49   : > { %576 = vmatprep.subr.mxu0 %v826_v2  ;;  %p745_p3 = por %p744_p2, %p743_p0 }
  0x4a   : > { %577 = vmatpush3.msra.mxu0 %v330_v10 }
  0x4b   : > { %578 = vmatprep.subr.mxu0 %v826_v2  ;;  %p746_p5 = pnand %p745_p3, %p739_p10 }
  0x4c   : > { %579 = vmatpush3.msra.mxu0 %v329_v11 }
  0x4d   : > { %580 = vmatprep.subr.mxu0 %v826_v2 }
  0x4e   : > { %581 = vmatpush3.msra.mxu0 %v328_v12 }
  0x4f   : > { %582 = vmatprep.subr.mxu0 %v826_v2 }
  0x50   : > { %583 = vmatpush3.msra.mxu0 %v327_v13 }
  0x51   : > { %584 = vmatprep.subr.mxu0 %v826_v2 }
  0x52   : > { %585 = vmatpush3.msra.mxu0 %v326_v14 }
  0x53   : > { %586 = vmatprep.subr.mxu0 %v826_v2 }
  0x54   : > { %587 = vmatpush3.msra.mxu0 %v325_v15 }
  0x55   : > { %588 = vmatprep.subr.mxu0 %v826_v2 }
  0x56   : > { %589 = vmatpush3.msra.mxu0 %v324_v16 }
  0x57   : > { %590 = vmatprep.subr.mxu0 %v826_v2 }
  0x58   : > { %591 = vmatpush3.msra.mxu0 %v323_v17 }
  0x59   : > { %592 = vmatprep.subr.mxu0 %v826_v2 }
  0x5a   : > { %593 = vmatpush3.msra.mxu0 %v322_v18 }
  0x5b   : > { %594 = vmatprep.subr.mxu0 %v826_v2 }
  0x5c   : > { %595 = vmatpush3.msra.mxu0 %v321_v19 }
  0x5d   : > { %596 = vmatprep.subr.mxu0 %v826_v2 }
  0x5e   : > { %597 = vmatpush3.msra.mxu0 %v320_v20 }
  0x5f   : > { %598 = vmatprep.subr.mxu0 %v826_v2 }
  0x60   : > { %599 = vmatpush3.msra.mxu0 %v319_v21 }
  0xca   : > { %v292_v6 = vpop.xlane.xlu0 %291 }
  0xcb   : > { %v294_v7 = vmul.f32 0.0078125, %v292_v6 }
  0xcd   : > { %v295_v8 = vsub.f32 %v988_v0, %v294_v7 }
  0xcf   : > { %v296_v9 = vmul.f32 %v295_v8, %v295_v8 }
  0xd1   : > { %297 = vadd.xlane.f32.xlu0 %v296_v9 }
 0x15a   : > { %v298_v22 = vpop.xlane.xlu0 %297 }
 0x15b   : > { %v299_v23 = vmul.f32 0.0078125, %v298_v22 }
 0x15d   : > { %v300_v24 = vadd.f32 1e-06, %v299_v23 }
 0x15f   : > { %680 = vrsqrt.f32 %v300_v24 }
 0x16c   : > { %v681_v25 = vpop.eup %680 }
 0x16d   : > { %v302_v27 = vmul.f32 %v681_v25, %v295_v8 }
 0x16f   : > { %v310_v29 = vmul.f32 %v544_v26, %v302_v27 }
 0x171   : > { %v318_v30 = vadd.f32 %v545_v28, %v310_v29 }
 0x173   : > { %601 = vmatmul.mubr.f32.vlgmr.msra.gmra.mxu0 %v318_v30 }
 0x233   : > { %v408_v32 = vpop.f32.mrf.mxu0 }
 0x234   : > { %v409_v33 = vadd.f32 %v546_v31, %v408_v32 }
 0x235   : > { %v602_v34 = vpop.f32.mrf.mxu0 }
 0x236   : > { %v412_v35 = vadd.f32 %v409_v33, %v988_v0 }
 0x238   : > { %413 = vst [vmem:[%s286_s13] sm:$0xff] %v412_v35 }
 0x239   : > { %749 = shalt.err (!%p746_p5)
}
 0x23a   : > { %s750_s3 = scalar_lea.hbm %s427_s15, 128  ;;  %s754_s28 = scalar_lea.hbm %s1049_s5, 256 }
 0x23b   : > { %p751_p7 = scmp.ne.s32.totalorder %s427_s15, %s750_s3  ;;  %p755_p9 = scmp.lt.s32.totalorder %s427_s15, %s1049_s5 }
 0x23c   : > { %p756_p11 = scmp.lt.s32.totalorder %s754_s28, %s750_s3 }
 0x23d   : > { %p752_p6 = pnand %p751_p7, %p946_p13 }
 0x23e   : > { %p757_p12 = por %p756_p11, %p755_p9 }
 0x23f   : > { %p753_p4 = pneg %p752_p6 }
 0x241   : > { %p758_p1 = pnand %p757_p12, %p753_p4 }
 0x243   : > { %761 = shalt.err (!%p758_p1)
}
 0x244   : > { %609 = dma.vmem_to_hbm [thread:$0]  (%p946_p13), %s430_s14, 128, %s427_s15, %s415_s8  }
 0x245 PF: > { %s441_s11 = sand.u32 1, %s800_s18   ;;  %p1065_p8 = scmp.ne.s32.totalorder %s1056_s29, 0 }
 0x246   : > { %p1066_p10 = scmp.ge.s32.totalorder %s820_s23, 2  ;;  %s442_s12 = scalar_lea.sflag [#allocation4], %s441_s11 }
 0x248   : > { %p620_p0 = pnand %p1066_p10, %p1065_p8 }
 0x24a   : > { %p621_p2 = pneg %p620_p0 }
 0x24c   : > { %795 = dma.done.wait (%p621_p2), %s442_s12, 128  }
 0x24d   : > { %797 = vsyncadd (%p621_p2), %s442_s12, 4294967168  ;;  %s22_s23 = sadd.s32 1, %s820_s23   ;;  %s1067_s17 = sld [smem:[#allocation11_spill]] }
 0x24e   : > { %p19_p3 = scmp.ge.s32.totalorder %s22_s23, 4   ;;  %s1068_s18 = smov %s804_s19 }
 0x24f   : > { %s1069_s19 = smov %s808_s20  ;;  %s1070_s20 = smov %s955_s7 }
 0x250   : > { %s1071_s21 = smov %s816_s22  ;;  %21 = sbr.rel (!%p19_p3) target bundleno = 9 (0x9), region = 93 }
 0x253   : > { %s1072_s22 = smov %s1067_s17 }
 0x255   :  { %447 = vsyncpa [#allocation3], 1 }
 0x256   :  { %449 = vsyncpa [#allocation3 + $0x1], 1 }
 0x257   :  { %450 = vsyncpa [#allocation6], 1 }
 0x258   :  { %451 = vsyncpa [#allocation4], 1 }
 0x259   :  { %453 = vsyncpa [#allocation4 + $0x1], 1 }

</bundles_post_ra>
